<compile_context>
chip_gen: v5e
topology: v5e:2x2
jax: 0.10.0
libtpu: 0.0.40
codegen_flags: <defaults>
</compile_context>

<pallas_src>
import math
import functools

import jax
import jax.numpy as jnp
from jax import lax
from jax.experimental import pallas as pl
from jax.experimental import pallas as _pl_unused  # noqa: F401
from jax.experimental.pallas import tpu as pltpu   # noqa: F401  (not needed at this size)


def _attn_kernel(x_ref, wqkv_ref, bqkv_ref, wo_ref, bo_ref, o_ref, *,
                 n_head, batch, seq):
    M, C = x_ref.shape                      # M = batch * seq
    H = n_head
    D = C // H

    x = x_ref[...].astype(jnp.bfloat16)     # bf16 MXU inputs, f32 accumulation

    # ---- fused QKV projection: one MXU matmul against lane-dense (C, 3C) weights.
    qkv = jnp.dot(x, wqkv_ref[...], preferred_element_type=jnp.float32)   # (M, 3C) f32
    qkv = qkv + bqkv_ref[...]               # f32 bias add; 1/sqrt(D) folded into Q cols
    qkv = qkv.astype(jnp.bfloat16)          # one cast for all of q, k, v

    # ---- head split: static lane slice + leading-dim reshape per head, stacked on
    # the leading (matmul batch) axis -> (H*B, T, D).
    # TODO(synk): replace with a single relayout (pltpu.einshape) if H*D grows.
    def to_heads(base):
        return jnp.concatenate(
            [qkv[:, base + h * D: base + (h + 1) * D].reshape(batch, seq, D)
             for h in range(H)],
            axis=0)                          # (H*B, T, D) bf16

    q = to_heads(0)
    k = to_heads(C)
    v = to_heads(2 * C)

    # ---- attention core: heads*batch ride the leading (batch) axis of the matmul.
    s = jnp.einsum('ztd,zsd->zts', q, k,
                   preferred_element_type=jnp.float32)        # (H*B, T, T) f32

    row = lax.broadcasted_iota(jnp.int32, (seq, seq), 0)
    col = lax.broadcasted_iota(jnp.int32, (seq, seq), 1)
    s = jnp.where((col <= row)[None], s, -1e30)               # finite causal mask

    m = jnp.max(s, axis=-1, keepdims=True)                    # f32 softmax (v5e-safe)
    p = jnp.exp(s - m)
    att = p * pl.reciprocal(jnp.sum(p, axis=-1, keepdims=True), approx=True)

    y = jnp.einsum('zts,zsd->ztd', att.astype(jnp.bfloat16), v,
                   preferred_element_type=jnp.float32)        # (H*B, T, D) f32

    # ---- head merge back to (M, C) = (B*T, H*D) with one lane-axis concat, then a
    # single (M, C) @ (C, C) output projection.
    y = y.astype(jnp.bfloat16)
    y2d = jnp.concatenate(
        [y[h * batch:(h + 1) * batch].reshape(M, D) for h in range(H)],
        axis=-1)                                              # (M, C) bf16

    out = jnp.dot(y2d, wo_ref[...], preferred_element_type=jnp.float32)
    out = out + bo_ref[...]                                   # (M, C) f32
    o_ref[...] = out.astype(o_ref.dtype)


def prepare_params(w_attn, b_attn, w_proj, b_proj, n_head):
    """One-time parameter re-layout (cache this with the model params).

    Inputs are in x @ W + b layout (torch W.T): w_attn (C, 3C), b_attn (1, 3C),
    w_proj (C, C), b_proj (1, C).  Folds 1/sqrt(D) into the Q columns in f32
    master weights, then casts MXU weights to bf16; biases stay f32.
    """
    C = w_attn.shape[0]
    D = C // n_head
    scale = 1.0 / math.sqrt(D)
    col_scale = jnp.concatenate(
        [jnp.full((C,), scale, jnp.float32), jnp.ones((2 * C,), jnp.float32)])
    wqkv = (w_attn.astype(jnp.float32) * col_scale[None, :]).astype(jnp.bfloat16)  # (C, 3C)
    bqkv = b_attn.astype(jnp.float32) * col_scale[None, :]                         # (1, 3C)
    wo = w_proj.astype(jnp.bfloat16)                                               # (C, C)
    bo = b_proj.astype(jnp.float32)                                                # (1, C)
    return wqkv, bqkv, wo, bo


def causal_self_attention(x, prepared_params, n_head):
    """x: (B, T, C); prepared_params from prepare_params()."""
    B, T, C = x.shape
    wqkv, bqkv, wo, bo = prepared_params
    kernel = functools.partial(_attn_kernel, n_head=n_head, batch=B, seq=T)
    out2d = pl.pallas_call(
        kernel,
        out_shape=jax.ShapeDtypeStruct((B * T, C), x.dtype),
    )(x.reshape(B * T, C), wqkv, bqkv, wo, bo)
    return out2d.reshape(B, T, C)


def reference_attention(x, w_attn, b_attn, w_proj, b_proj, n_head):
    """Pure-JAX f32 reference mirroring the PyTorch forward (dropout=0, eval)."""
    B, T, C = x.shape
    D = C // n_head
    qkv = x @ w_attn + b_attn                       # (B, T, 3C)
    q, k, v = jnp.split(qkv, 3, axis=-1)
    q = q.reshape(B, T, n_head, D).transpose(0, 2, 1, 3)
    k = k.reshape(B, T, n_head, D).transpose(0, 2, 1, 3)
    v = v.reshape(B, T, n_head, D).transpose(0, 2, 1, 3)
    att = jnp.einsum('bhtd,bhsd->bhts', q, k) / math.sqrt(D)
    mask = jnp.tril(jnp.ones((T, T), bool))
    att = jnp.where(mask[None, None], att, -jnp.inf)
    att = jax.nn.softmax(att, axis=-1)
    y = jnp.einsum('bhts,bhsd->bhtd', att, v)
    y = y.transpose(0, 2, 1, 3).reshape(B, T, C)
    return y @ w_proj + b_proj


if __name__ == "__main__":
    # config: n_embd=32, n_head=4, bias=True, dropout=0.0, sequence_length=8
    B, T, C, n_head = 2, 8, 32, 4

    key = jax.random.PRNGKey(0)
    kx, k1, k2, k3, k4 = jax.random.split(key, 5)

    x = jax.random.normal(kx, (B, T, C), dtype=jnp.float32)

    # Deterministic PyTorch-Linear-style uniform init, bound = 1/sqrt(fan_in).
    bound = 1.0 / math.sqrt(C)
    w_attn = jax.random.uniform(k1, (C, 3 * C), jnp.float32, -bound, bound)
    b_attn = jax.random.uniform(k2, (1, 3 * C), jnp.float32, -bound, bound)
    w_proj = jax.random.uniform(k3, (C, C), jnp.float32, -bound, bound)
    b_proj = jax.random.uniform(k4, (1, C), jnp.float32, -bound, bound)

    # One-time re-layout / cast (lives with the params in a real model).
    params = jax.tree_util.tree_map(
        jax.block_until_ready, prepare_params(w_attn, b_attn, w_proj, b_proj, n_head))

    y = causal_self_attention(x, params, n_head)
    y = jax.block_until_ready(y)

    y_ref = reference_attention(x, w_attn, b_attn, w_proj, b_proj, n_head)
    # bf16 matmul inputs with f32 accumulation -> ~1e-2 level differences vs f32 ref.
    assert jnp.allclose(y, y_ref, atol=5e-2, rtol=5e-2), "mismatch vs reference"

    print("KERNEL_OK")
</pallas_src>

<mosaic_0001>
module attributes {stable_mosaic.version = 11 : i64} {
  func.func @_attn_kernel(%arg0: memref<16x32xf32, #tpu.memory_space<vmem>>, %arg1: memref<32x96xbf16, #tpu.memory_space<vmem>>, %arg2: memref<1x96xf32, #tpu.memory_space<vmem>>, %arg3: memref<32x32xbf16, #tpu.memory_space<vmem>>, %arg4: memref<1x32xf32, #tpu.memory_space<vmem>>, %arg5: memref<16x32xf32, #tpu.memory_space<vmem>>) attributes {dimension_semantics = [], scalar_prefetch = 0 : i64, scratch_operands = 0 : i64, tpu.core_type = #tpu.core_type<tc>} {
    %c0 = arith.constant 0 : index
    %c0_0 = arith.constant 0 : index
    %0 = vector.load %arg0[%c0, %c0_0] : memref<16x32xf32, #tpu.memory_space<vmem>>, vector<16x32xf32>
    %1 = arith.truncf %0 : vector<16x32xf32> to vector<16x32xbf16>
    %c0_1 = arith.constant 0 : index
    %c0_2 = arith.constant 0 : index
    %2 = vector.load %arg1[%c0_1, %c0_2] : memref<32x96xbf16, #tpu.memory_space<vmem>>, vector<32x96xbf16>
    %cst = arith.constant dense<0.000000e+00> : vector<16x96xf32>
    %3 = tpu.matmul %1, %2, %cst {dimension_numbers = #tpu.dot_dimension_numbers<[1], [0], [0], [1], [0, 0, 1, 1], [], []>} : vector<16x32xbf16>, vector<32x96xbf16>, vector<16x96xf32> -> vector<16x96xf32>
    %c0_3 = arith.constant 0 : index
    %c0_4 = arith.constant 0 : index
    %4 = vector.load %arg2[%c0_3, %c0_4] : memref<1x96xf32, #tpu.memory_space<vmem>>, vector<1x96xf32>
    %5 = vector.broadcast %4 : vector<1x96xf32> to vector<16x96xf32>
    %6 = arith.addf %3, %5 : vector<16x96xf32>
    %7 = arith.truncf %6 : vector<16x96xf32> to vector<16x96xbf16>
    %8 = vector.extract_strided_slice %7 {offsets = [0, 0], sizes = [16, 8], strides = [1, 1]} : vector<16x96xbf16> to vector<16x8xbf16>
    %9 = vector.shape_cast %8 : vector<16x8xbf16> to vector<2x8x8xbf16>
    %10 = vector.extract_strided_slice %7 {offsets = [0, 8], sizes = [16, 8], strides = [1, 1]} : vector<16x96xbf16> to vector<16x8xbf16>
    %11 = vector.shape_cast %10 : vector<16x8xbf16> to vector<2x8x8xbf16>
    %12 = vector.extract_strided_slice %7 {offsets = [0, 16], sizes = [16, 8], strides = [1, 1]} : vector<16x96xbf16> to vector<16x8xbf16>
    %13 = vector.shape_cast %12 : vector<16x8xbf16> to vector<2x8x8xbf16>
    %14 = vector.extract_strided_slice %7 {offsets = [0, 24], sizes = [16, 8], strides = [1, 1]} : vector<16x96xbf16> to vector<16x8xbf16>
    %15 = vector.shape_cast %14 : vector<16x8xbf16> to vector<2x8x8xbf16>
    %16 = tpu.concatenate %9, %11, %13, %15 in 0 : vector<2x8x8xbf16>, vector<2x8x8xbf16>, vector<2x8x8xbf16>, vector<2x8x8xbf16> -> vector<8x8x8xbf16>
    %17 = vector.extract_strided_slice %7 {offsets = [0, 32], sizes = [16, 8], strides = [1, 1]} : vector<16x96xbf16> to vector<16x8xbf16>
    %18 = vector.shape_cast %17 : vector<16x8xbf16> to vector<2x8x8xbf16>
    %19 = vector.extract_strided_slice %7 {offsets = [0, 40], sizes = [16, 8], strides = [1, 1]} : vector<16x96xbf16> to vector<16x8xbf16>
    %20 = vector.shape_cast %19 : vector<16x8xbf16> to vector<2x8x8xbf16>
    %21 = vector.extract_strided_slice %7 {offsets = [0, 48], sizes = [16, 8], strides = [1, 1]} : vector<16x96xbf16> to vector<16x8xbf16>
    %22 = vector.shape_cast %21 : vector<16x8xbf16> to vector<2x8x8xbf16>
    %23 = vector.extract_strided_slice %7 {offsets = [0, 56], sizes = [16, 8], strides = [1, 1]} : vector<16x96xbf16> to vector<16x8xbf16>
    %24 = vector.shape_cast %23 : vector<16x8xbf16> to vector<2x8x8xbf16>
    %25 = tpu.concatenate %18, %20, %22, %24 in 0 : vector<2x8x8xbf16>, vector<2x8x8xbf16>, vector<2x8x8xbf16>, vector<2x8x8xbf16> -> vector<8x8x8xbf16>
    %26 = vector.extract_strided_slice %7 {offsets = [0, 64], sizes = [16, 8], strides = [1, 1]} : vector<16x96xbf16> to vector<16x8xbf16>
    %27 = vector.shape_cast %26 : vector<16x8xbf16> to vector<2x8x8xbf16>
    %28 = vector.extract_strided_slice %7 {offsets = [0, 72], sizes = [16, 8], strides = [1, 1]} : vector<16x96xbf16> to vector<16x8xbf16>
    %29 = vector.shape_cast %28 : vector<16x8xbf16> to vector<2x8x8xbf16>
    %30 = vector.extract_strided_slice %7 {offsets = [0, 80], sizes = [16, 8], strides = [1, 1]} : vector<16x96xbf16> to vector<16x8xbf16>
    %31 = vector.shape_cast %30 : vector<16x8xbf16> to vector<2x8x8xbf16>
    %32 = vector.extract_strided_slice %7 {offsets = [0, 88], sizes = [16, 8], strides = [1, 1]} : vector<16x96xbf16> to vector<16x8xbf16>
    %33 = vector.shape_cast %32 : vector<16x8xbf16> to vector<2x8x8xbf16>
    %34 = tpu.concatenate %27, %29, %31, %33 in 0 : vector<2x8x8xbf16>, vector<2x8x8xbf16>, vector<2x8x8xbf16>, vector<2x8x8xbf16> -> vector<8x8x8xbf16>
    "tpu.trace_start"() <{level = 10 : i32, message = "ztd,zsd->zts"}> : () -> ()
    %cst_5 = arith.constant dense<0.000000e+00> : vector<8x8x8xf32>
    %35 = tpu.matmul %16, %25, %cst_5 {dimension_numbers = #tpu.dot_dimension_numbers<[2], [2], [1], [1], [0, 0, 0, 1, 1, 1], [0], [0]>} : vector<8x8x8xbf16>, vector<8x8x8xbf16>, vector<8x8x8xf32> -> vector<8x8x8xf32>
    "tpu.trace_stop"() : () -> ()
    %36 = tpu.iota {dimensions = array<i32: 0>} : vector<8x8xi32>
    %37 = tpu.iota {dimensions = array<i32: 1>} : vector<8x8xi32>
    %38 = arith.cmpi sle, %37, %36 : vector<8x8xi32>
    %39 = vector.shape_cast %38 : vector<8x8xi1> to vector<1x8x8xi1>
    %cst_6 = arith.constant -1.000000e+30 : f32
    %40 = vector.shape_cast %39 : vector<1x8x8xi1> to vector<1x8x8xi1>
    %41 = vector.broadcast %40 : vector<1x8x8xi1> to vector<8x8x8xi1>
    %42 = vector.broadcast %cst_6 : f32 to vector<8x8x8xf32>
    %43 = arith.select %41, %35, %42 : vector<8x8x8xi1>, vector<8x8x8xf32>
    %cst_7 = arith.constant dense<0xFF800000> : vector<8x8xf32>
    %44 = vector.multi_reduction <maximumf>, %43, %cst_7 [2] : vector<8x8x8xf32> to vector<8x8xf32>
    %45 = vector.shape_cast %44 : vector<8x8xf32> to vector<8x8x1xf32>
    %46 = vector.broadcast %45 : vector<8x8x1xf32> to vector<8x8x8xf32>
    %47 = arith.subf %43, %46 : vector<8x8x8xf32>
    %48 = math.exp %47 : vector<8x8x8xf32>
    %cst_8 = arith.constant dense<0.000000e+00> : vector<8x8xf32>
    %49 = vector.multi_reduction <add>, %48, %cst_8 [2] : vector<8x8x8xf32> to vector<8x8xf32>
    %50 = vector.shape_cast %49 : vector<8x8xf32> to vector<8x8x1xf32>
    %51 = tpu.reciprocal %50 {approx = true} : vector<8x8x1xf32> -> vector<8x8x1xf32>
    %52 = vector.broadcast %51 : vector<8x8x1xf32> to vector<8x8x8xf32>
    %53 = arith.mulf %48, %52 : vector<8x8x8xf32>
    %54 = arith.truncf %53 : vector<8x8x8xf32> to vector<8x8x8xbf16>
    "tpu.trace_start"() <{level = 10 : i32, message = "zts,zsd->ztd"}> : () -> ()
    %cst_9 = arith.constant dense<0.000000e+00> : vector<8x8x8xf32>
    %55 = tpu.matmul %54, %34, %cst_9 {dimension_numbers = #tpu.dot_dimension_numbers<[2], [1], [1], [2], [0, 0, 0, 1, 1, 2], [0], [0]>} : vector<8x8x8xbf16>, vector<8x8x8xbf16>, vector<8x8x8xf32> -> vector<8x8x8xf32>
    "tpu.trace_stop"() : () -> ()
    %56 = arith.truncf %55 : vector<8x8x8xf32> to vector<8x8x8xbf16>
    %57 = vector.extract_strided_slice %56 {offsets = [0, 0, 0], sizes = [2, 8, 8], strides = [1, 1, 1]} : vector<8x8x8xbf16> to vector<2x8x8xbf16>
    %58 = vector.shape_cast %57 : vector<2x8x8xbf16> to vector<16x8xbf16>
    %59 = vector.extract_strided_slice %56 {offsets = [2, 0, 0], sizes = [2, 8, 8], strides = [1, 1, 1]} : vector<8x8x8xbf16> to vector<2x8x8xbf16>
    %60 = vector.shape_cast %59 : vector<2x8x8xbf16> to vector<16x8xbf16>
    %61 = vector.extract_strided_slice %56 {offsets = [4, 0, 0], sizes = [2, 8, 8], strides = [1, 1, 1]} : vector<8x8x8xbf16> to vector<2x8x8xbf16>
    %62 = vector.shape_cast %61 : vector<2x8x8xbf16> to vector<16x8xbf16>
    %63 = vector.extract_strided_slice %56 {offsets = [6, 0, 0], sizes = [2, 8, 8], strides = [1, 1, 1]} : vector<8x8x8xbf16> to vector<2x8x8xbf16>
    %64 = vector.shape_cast %63 : vector<2x8x8xbf16> to vector<16x8xbf16>
    %65 = tpu.concatenate %58, %60, %62, %64 in 1 : vector<16x8xbf16>, vector<16x8xbf16>, vector<16x8xbf16>, vector<16x8xbf16> -> vector<16x32xbf16>
    %c0_10 = arith.constant 0 : index
    %c0_11 = arith.constant 0 : index
    %66 = vector.load %arg3[%c0_10, %c0_11] : memref<32x32xbf16, #tpu.memory_space<vmem>>, vector<32x32xbf16>
    %cst_12 = arith.constant dense<0.000000e+00> : vector<16x32xf32>
    %67 = tpu.matmul %65, %66, %cst_12 {dimension_numbers = #tpu.dot_dimension_numbers<[1], [0], [0], [1], [0, 0, 1, 1], [], []>} : vector<16x32xbf16>, vector<32x32xbf16>, vector<16x32xf32> -> vector<16x32xf32>
    %c0_13 = arith.constant 0 : index
    %c0_14 = arith.constant 0 : index
    %68 = vector.load %arg4[%c0_13, %c0_14] : memref<1x32xf32, #tpu.memory_space<vmem>>, vector<1x32xf32>
    %69 = vector.broadcast %68 : vector<1x32xf32> to vector<16x32xf32>
    %70 = arith.addf %67, %69 : vector<16x32xf32>
    %c0_15 = arith.constant 0 : index
    %c0_16 = arith.constant 0 : index
    %71 = vector.load %arg5[%c0_15, %c0_16] : memref<16x32xf32, #tpu.memory_space<vmem>>, vector<16x32xf32>
    tpu.vector_store %arg5[%c0_15, %c0_16], %70 {strides = array<i32>} : memref<16x32xf32, #tpu.memory_space<vmem>>, vector<16x32xf32>,
    return
  }
}

</mosaic_0001>

<bundles_post_ra>
// kernel: tpu_custom_call.1
= control target key start
LH: loop header
LB: loop body
LE: loop exit
PB: predicated region body
PF: predicated region fallthrough
CT: control target
= control target key end

     0   :  { %10 = vsyncpa [#allocation3], 0  ;;  %s1074_s0 = inlined_call_operand.hbm [shape: f32[16,32], index: 0, kind: input, shape index: {}]   ;;  %s1075_s1 = inlined_call_operand.hbm [shape: bf16[32,96], index: 1, kind: input, shape index: {}]   ;;  %s1076_s2 = inlined_call_operand.vmem [shape: f32[1,96], index: 2, kind: input, shape index: {}]   ;;  %s1077_s3 = inlined_call_operand.hbm [shape: bf16[32,32], index: 3, kind: input, shape index: {}]   ;;  %s1078_s4 = inlined_call_operand.vmem [shape: f32[1,32], index: 4, kind: input, shape index: {}]   ;;  %s1079_s5 = inlined_call_operand.hbm [shape: f32[16,32], index: 5, kind: output, shape index: {}]  }
   0x1   :  { %11 = vsyncpa [#allocation6], 0  ;;  %s30_s20 = sshll.u32 %s1075_s1, 4  ;;  %s31_s20 = int_to_ptr.hbm [resolvable:$true] %s30_s20 }
   0x2   :  { %12 = vsyncpa [#allocation4], 0  ;;  %s880_s21 = smov [#allocation5]   ;;  %s17_s25 = sshll.u32 %s1074_s0, 4  ;;  %s18_s25 = int_to_ptr.hbm [resolvable:$true] %s17_s25 }
   0x3   :  { %s32_s22 = sshll.u32 %s880_s21, 4  ;;  %s881_s26 = smov 64   ;;  %s33_s22 = int_to_ptr.vmem [resolvable:$true] %s32_s22 }
   0x4   :  { %s882_s27 = smov 4   ;;  %s883_s28 = smov [#allocation2]  }
   0x5   :  { %38 = dma.hbm_to_vmem [thread:$0]  %s31_s20, 256, %s33_s22, [#allocation6], %s881_s26, %s881_s26, %s882_s27  }
   0x6   :  { %s19_s29 = sshll.u32 %s883_s28, 4  ;;  %s884_s30 = smov 128   ;;  %s20_s29 = int_to_ptr.vmem [resolvable:$true] %s19_s29 }
   0x7   :  { %s885_s1 = smov 8   ;;  %s45_s8 = sshll.u32 %s1077_s3, 4  ;;  %s46_s8 = int_to_ptr.hbm [resolvable:$true] %s45_s8 }
   0x8   :  { %25 = dma.hbm_to_vmem [thread:$0]  %s18_s25, 256, %s20_s29, [#allocation3], %s884_s30, %s884_s30, %s885_s1  }
   0x9   :  { %s886_s0 = smov [#allocation7]  }
   0xa   :  { %s47_s9 = sshll.u32 %s886_s0, 4  ;;  %s48_s9 = int_to_ptr.vmem [resolvable:$true] %s47_s9 }
   0xb   :  { %53 = dma.hbm_to_vmem [thread:$0]  %s46_s8, 256, %s48_s9, [#allocation6], %s881_s26, %s881_s26, %s882_s27  }
   0xc   :  { %874 = dma.done.wait [#allocation3], 256  }
   0xd   :  { %875 = vsyncadd [#allocation3], 4294967040 }
   0xe   :  { %876 = dma.done.wait [#allocation6], 512  }
   0xf   :  { %877 = vsyncadd [#allocation6], 4294966784  ;;  %v727_v0 = vld [vmem:[#allocation5 + $0x8] sm:$0xff]  ;;  %v726_v1 = vld [vmem:[#allocation5] sm:$0xff]  ;;  %vm92_vm0 = vcmask 261120   ;;  %s887_s11 = smov 112   ;;  %v311_v39 = vlaneseq }
  0x10   :  { %102 = vmatpush.bf16.msra.mxu0 %v727_v0  ;;  %v69_v2 = vld [vmem:[#allocation2] sm:$0xff]  ;;  %v70_v3 = vld [vmem:[#allocation2 + $0x8] sm:$0xff]  ;;  %s888_s12 = smov 120   ;;  %s889_s13 = smov 104   ;;  %vm130_vm1 = vcmask 64512   ;;  %vm427_vm3 = vcmask 1043456  }
  0x11   :  { %v71_v4 = vpack.c.bf16 %v70_v3, %v69_v2  ;;  %v744_v5 = vld [vmem:[%s1076_s2] ss:$0 sm:$0xff]  ;;  %s890_s2 = smov 96   ;;  %v312_v42 = vshrl.u32 %v311_v39, 7  ;;  %v314_v43 = vand.u32 127, %v311_v39  ;;  %s891_s14 = smov 16  }
  0x12   :  { %s892_s15 = smov 24   ;;  %vm628_vm4 = vcmask 130048   ;;  %vm631_vm5 = vcmask 195584   ;;  %s893_s18 = smov [#allocation8]  }
  0x13   :  { %vm982_vm2 = vcmp.le.s32.totalorder %v314_v43, %v312_v42  ;;  %s676_s19 = sshll.u32 %s893_s18, 4  ;;  %s678_s22 = sshll.u32 %s1079_s5, 4  ;;  %s677_s19 = int_to_ptr.vmem [resolvable:$true] %s676_s19  ;;  %s679_s22 = int_to_ptr.hbm [resolvable:$true] %s678_s22 }
  0x14   :  { %103 = vmatpush.bf16.msra.mxu0 %v726_v1 }
  0x17   :  { %700 = vmatmul.msk.bf16.vlgmr.msra.gmra.mxu0 %vm92_vm0, %v71_v4 }
  0x94   :  { %v105_v6 = vpop.f32.mrf.mxu0 }
  0x95   :  { %v106_v7 = vadd.f32 %v744_v5, %v105_v6 }
  0x97   :  { %v110_v8 = vpack.c.bf16 %v106_v7, %v106_v7 }
  0x99   :  { %118 = vrot.lane.b32.xlu2 %v110_v8, %s887_s11  ;;  %114 = vrot.lane.b32.xlu0 %v110_v8, %s888_s12  ;;  %v126_v12 = vunpack.c.l.b16 %v110_v8 }
  0x9b   :  { %v127_v14 = vpack.c.b16 %v126_v12, %v126_v12 }
  0x9c   :  { %v107_v9 = vpop.f32.mrf.mxu0 }
  0x9d   :  { %v108_v10 = vadd.f32 %v744_v5, %v107_v9 }
  0x9f   :  { %v111_v11 = vpack.c.bf16 %v108_v10, %v108_v10 }
  0xa1   :  { %120 = vrot.lane.b32.xlu1 %v111_v11, %s887_s11  ;;  %124 = vrot.lane.b32.xlu2 %v111_v11, %s889_s13  ;;  %v150_v13 = vunpack.c.l.b16 %v111_v11 }
  0xa2   :  { %116 = vrot.lane.b32.xlu0 %v111_v11, %s888_s12 }
  0xa3   :  { %v151_v15 = vpack.c.b16 %v150_v13, %v150_v13 }
  0xa9   :  { %122 = vrot.lane.b32.xlu1 %v110_v8, %s889_s13  ;;  %128 = vrot.lane.b32.xlu2 %v127_v14, %s890_s2 }
  0xaa   :  { %152 = vrot.lane.b32.xlu0 %v151_v15, %s890_s2 }
  0xf3   :  { %v946_v16 = vpop.permute.xlu2 %118 }
  0xf4   :  { %v219_v30 = vunpack.c.l.b16 %v946_v16 }
  0xf6   :  { %v968_v37 = vpack.c.b16 %v219_v30, %v219_v30 }
  0xfb   :  { %v948_v17 = vpop.permute.xlu2 %124 }
  0xfc   :  { %v288_v29 = vunpack.c.l.b16 %v948_v17 }
  0xfe   :  { %v964_v35 = vpack.c.b16 %v288_v29, %v288_v29 }
 0x103   :  { %v129_v18 = vpop.permute.xlu2 %128 }
 0x104   :  { %v135_v19 = vsel %vm130_vm1, %v129_v18, 0 }
 0x105   :  { %144 = vmatpush.bf16.xpose.msra.mxu1 %v135_v19 }
 0x10b   :  { %v115_v20 = vpop.permute.xlu0 %114 }
 0x10c   :  { %v173_v21 = vunpack.c.l.b16 %v115_v20  ;;  %701 = vmatmul.msk.bf16.vlgmr.msra.gmra.mxu1 %vm130_vm1, %v110_v8 }
 0x10e   :  { %v174_v22 = vpack.c.b16 %v173_v21, %v173_v21 }
 0x110   :  { %175 = vrot.lane.b32.xlu1 %v174_v22, %s890_s2 }
 0x113   :  { %v121_v23 = vpop.permute.xlu1 %120 }
 0x114   :  { %v242_v24 = vunpack.c.l.b16 %v121_v23  ;;  %v117_v25 = vpop.permute.xlu0 %116 }
 0x115   :  { %v196_v26 = vunpack.c.l.b16 %v117_v25 }
 0x116   :  { %v953_v27 = vpack.c.b16 %v242_v24, %v242_v24 }
 0x117   :  { %v955_v28 = vpack.c.b16 %v196_v26, %v196_v26 }
 0x118   :  { %244 = vrot.lane.b32.xlu1 %v953_v27, %s890_s2 }
 0x119   :  { %198 = vrot.lane.b32.xlu0 %v955_v28, %s890_s2 }
 0x11b   :  { %v123_v31 = vpop.permute.xlu1 %122 }
 0x11c   :  { %v265_v32 = vunpack.c.l.b16 %v123_v31  ;;  %v153_v33 = vpop.permute.xlu0 %152 }
 0x11d   :  { %v158_v34 = vsel %vm130_vm1, %v153_v33, 0 }
 0x11e   :  { %v966_v36 = vpack.c.b16 %v265_v32, %v265_v32  ;;  %167 = vmatpush.bf16.xpose.msra.mxu2 %v158_v34 }
 0x120   :  { %290 = vrot.lane.b32.xlu1 %v964_v35, %s890_s2  ;;  %267 = vrot.lane.b32.xlu2 %v966_v36, %s890_s2 }
 0x121   :  { %221 = vrot.lane.b32.xlu0 %v968_v37, %s890_s2 }
 0x125   :  { %702 = vmatmul.msk.bf16.vlgmr.msra.gmra.mxu2 %vm130_vm1, %v111_v11 }
 0x128   :  { %444 = vrot.lane.b32.xlu1 %v151_v15, %s881_s26  ;;  %465 = vrot.lane.b32.xlu2 %v174_v22, %s881_s26 }
 0x129   :  { %422 = vrot.lane.b32.xlu0 %v127_v14, %s881_s26 }
 0x17a   :  { %v268_v38 = vpop.permute.xlu2 %267 }
 0x17b   :  { %v273_v44 = vsel %vm130_vm1, %v268_v38, 0 }
 0x182   :  { %v176_v40 = vpop.permute.xlu1 %175  ;;  %v466_v46 = vpop.permute.xlu2 %465 }
 0x183   :  { %v181_v41 = vsel %vm130_vm1, %v176_v40, 0  ;;  %v471_v53 = vsel %vm427_vm3, %v466_v46, 0 }
 0x184   :  { %190 = vmatpush.bf16.xpose.msra.mxu3 %v181_v41 }
 0x189   :  { %v146_v47 = vpop.f32.mrf.mxu1 }
 0x18a   :  { %v318_v48 = vsel %vm982_vm2, %v146_v47, -1e+30  ;;  %v245_v49 = vpop.permute.xlu1 %244 }
 0x18b   :  { %v199_v50 = vpop.permute.xlu0 %198  ;;  %703 = vmatmul.msk.bf16.vlgmr.msra.gmra.mxu3 %vm130_vm1, %v115_v20  ;;  %v250_v51 = vsel %vm130_vm1, %v245_v49, 0  ;;  %v326_v52 = vsel %vm130_vm1, %v318_v48, -inf }
 0x18c   :  { %282 = vmatpush.bf16.xpose.msrb.mxu3 %v273_v44  ;;  %v204_v54 = vsel %vm130_vm1, %v199_v50, 0  ;;  %259 = vmatpush.bf16.xpose.msrb.mxu2 %v250_v51 }
 0x18d   :  { %327 = vmax.xlane.f32.xlu1 %v326_v52  ;;  %213 = vmatpush.bf16.xpose.msrb.mxu0 %v204_v54 }
 0x191   :  { %v148_v55 = vpop.f32.mrf.mxu1 }
 0x192   :  { %v291_v56 = vpop.permute.xlu1 %290 }
 0x193   :  { %v296_v57 = vsel %vm130_vm1, %v291_v56, 0  ;;  %v222_v58 = vpop.permute.xlu0 %221  ;;  %706 = vmatmul.msk.bf16.vlgmr.msrb.gmra.mxu2 %vm130_vm1, %v121_v23 }
 0x194   :  { %480 = vmatpush.bf16.msra.mxu3 %v471_v53  ;;  %704 = vmatmul.msk.bf16.vlgmr.msrb.gmra.mxu0 %vm130_vm1, %v117_v25  ;;  %v227_v59 = vsel %vm130_vm1, %v222_v58, 0 }
 0x195   :  { %236 = vmatpush.bf16.xpose.msrb.mxu1 %v227_v59  ;;  %305 = vmatpush.bf16.xpose.msra.mxu0 %v296_v57 }
 0x19a   :  { %v445_v60 = vpop.permute.xlu1 %444 }
 0x19b   :  { %v450_v61 = vsel %vm427_vm3, %v445_v60, 0  ;;  %v423_v62 = vpop.permute.xlu0 %422  ;;  %707 = vmatmul.msk.bf16.vlgmr.msrb.gmra.mxu3 %vm130_vm1, %v123_v31 }
 0x19c   :  { %v429_v63 = vsel %vm427_vm3, %v423_v62, 0  ;;  %705 = vmatmul.msk.bf16.vlgmr.msrb.gmra.mxu1 %vm130_vm1, %v946_v16  ;;  %459 = vmatpush.bf16.msra.mxu2 %v450_v61 }
 0x19d   :  { %438 = vmatpush.bf16.msra.mxu1 %v429_v63 }
 0x1a4   :  { %708 = vmatmul.msk.bf16.vlgmr.msra.gmra.mxu0 %vm130_vm1, %v948_v17 }
 0x1a6   :  { %486 = vrot.lane.b32.xlu1 %v955_v28, %s881_s26 }
 0x1a8   :  { %v169_v0 = vpop.f32.mrf.mxu2 }
 0x1a9   :  { %v319_v1 = vsel %vm982_vm2, %v169_v0, -1e+30 }
 0x1aa   :  { %v329_v2 = vsel %vm130_vm1, %v319_v1, -inf }
 0x1ab   :  { %330 = vmax.xlane.f32.xlu2 %v329_v2 }
 0x1b0   :  { %v171_v3 = vpop.f32.mrf.mxu2 }
 0x200   :  { %v328_v4 = vpop.xlane.xlu1 %327 }
 0x201   :  { %v350_v5 = vsub.f32 %v318_v48, %v328_v4 }
 0x203   :  { %v358_v6 = vmul.f32 1.442695, %v350_v5 }
 0x205   :  { %746 = vpow2.f32 %v358_v6 }
 0x20b   :  { %v747_v16 = vpop.eup %746 }
 0x20c   :  { %v374_v21 = vsel %vm130_vm1, %v747_v16, 0.0 }
 0x20e   :  { %v192_v7 = vpop.f32.mrf.mxu3 }
 0x20f   :  { %v320_v8 = vsel %vm982_vm2, %v192_v7, -1e+30 }
 0x210   :  { %v332_v9 = vsel %vm130_vm1, %v320_v8, -inf }
 0x211   :  { %v215_v10 = vpop.f32.mrf.mxu0  ;;  %333 = vmax.xlane.f32.xlu0 %v332_v9 }
 0x212   :  { %v321_v11 = vsel %vm982_vm2, %v215_v10, -1e+30 }
 0x213   :  { %v335_v12 = vsel %vm130_vm1, %v321_v11, -inf }
 0x214   :  { %336 = vmax.xlane.f32.xlu2 %v335_v12 }
 0x216   :  { %v194_v13 = vpop.f32.mrf.mxu3  ;;  %v261_v14 = vpop.f32.mrf.mxu2 }
 0x217   :  { %v323_v28 = vsel %vm982_vm2, %v261_v14, -1e+30 }
 0x218   :  { %v487_v15 = vpop.permute.xlu1 %486  ;;  %v341_v34 = vsel %vm130_vm1, %v323_v28, -inf }
 0x219   :  { %v492_v17 = vsel %vm427_vm3, %v487_v15, 0  ;;  %v217_v18 = vpop.f32.mrf.mxu0  ;;  %v238_v19 = vpop.f32.mrf.mxu1 }
 0x21a   :  { %501 = vmatpush.bf16.msrb.mxu0 %v492_v17  ;;  %v322_v20 = vsel %vm982_vm2, %v238_v19, -1e+30 }
 0x21b   :  { %v338_v22 = vsel %vm130_vm1, %v322_v20, -inf }
 0x21c   :  { %375 = vadd.xlane.f32.xlu2 %v374_v21  ;;  %339 = vmax.xlane.f32.xlu1 %v338_v22 }
 0x21e   :  { %v331_v23 = vpop.xlane.xlu2 %330  ;;  %v263_v24 = vpop.f32.mrf.mxu2 }
 0x21f   :  { %v351_v25 = vsub.f32 %v319_v1, %v331_v23  ;;  %v284_v26 = vpop.f32.mrf.mxu3 }
 0x220   :  { %v324_v29 = vsel %vm982_vm2, %v284_v26, -1e+30 }
 0x221   :  { %v360_v30 = vmul.f32 1.442695, %v351_v25  ;;  %v240_v31 = vpop.f32.mrf.mxu1  ;;  %v307_v32 = vpop.f32.mrf.mxu0  ;;  %v344_v33 = vsel %vm130_vm1, %v324_v29, -inf }
 0x222   :  { %345 = vmax.xlane.f32.xlu0 %v344_v33  ;;  %v325_v39 = vsel %vm982_vm2, %v307_v32, -1e+30 }
 0x223   :  { %748 = vpow2.f32 %v360_v30  ;;  %v347_v43 = vsel %vm130_vm1, %v325_v39, -inf }
 0x224   :  { %342 = vmax.xlane.f32.xlu2 %v341_v34 }
 0x227   :  { %v286_v38 = vpop.f32.mrf.mxu3 }
 0x229   :  { %v749_v40 = vpop.eup %748  ;;  %v309_v41 = vpop.f32.mrf.mxu0 }
 0x22a   :  { %v377_v42 = vsel %vm130_vm1, %v749_v40, 0.0 }
 0x22b   :  { %378 = vadd.xlane.f32.xlu0 %v377_v42 }
 0x22c   :  { %348 = vmax.xlane.f32.xlu2 %v347_v43 }
 0x244   :  { %528 = vrot.lane.b32.xlu2 %v953_v27, %s881_s26 }
 0x284   :  { %v334_v48 = vpop.xlane.xlu0 %333 }
 0x285   :  { %v352_v51 = vsub.f32 %v320_v8, %v334_v48 }
 0x287   :  { %v337_v44 = vpop.xlane.xlu2 %336  ;;  %v362_v55 = vmul.f32 1.442695, %v352_v51 }
 0x288   :  { %v353_v46 = vsub.f32 %v321_v11, %v337_v44 }
 0x28a   :  { %v364_v47 = vmul.f32 1.442695, %v353_v46 }
 0x28c   :  { %750 = vpow2.f32 %v364_v47 }
 0x28f   :  { %v340_v49 = vpop.xlane.xlu1 %339  ;;  %v376_v50 = vpop.xlane.xlu2 %375 }
 0x290   :  { %v354_v45 = vsub.f32 %v322_v20, %v340_v49  ;;  %752 = vrcp.f32 %v376_v50 }
 0x292   :  { %v751_v52 = vpop.eup %750  ;;  %v366_v53 = vmul.f32 1.442695, %v354_v45 }
 0x293   :  { %v383_v54 = vsel %vm130_vm1, %v751_v52, 0.0 }
 0x294   :  { %754 = vpow2.f32 %v366_v53  ;;  %384 = vadd.xlane.f32.xlu0 %v383_v54 }
 0x295   :  { %v346_v56 = vpop.xlane.xlu0 %345  ;;  %756 = vpow2.f32 %v362_v55 }
 0x296   :  { %v753_v57 = vpop.eup %752  ;;  %v356_v27 = vsub.f32 %v324_v29, %v346_v56 }
 0x297   :  { %v406_v58 = vmul.f32 %v753_v57, %v747_v16  ;;  %v343_v59 = vpop.xlane.xlu2 %342 }
 0x298   :  { %v370_v60 = vmul.f32 1.442695, %v356_v27  ;;  %v355_v61 = vsub.f32 %v323_v28, %v343_v59 }
 0x299   :  { %v414_v62 = vpack.c.bf16 %v406_v58, %v406_v58 }
 0x29a   :  { %v1033_v63 = vpop.eup %754  ;;  %758 = vpow2.f32 %v370_v60  ;;  %v368_v0 = vmul.f32 1.442695, %v355_v61 }
 0x29b   :  { %709 = vmatmul.msk.bf16.vlgmr.msra.gmra.mxu1 %vm130_vm1, %v414_v62  ;;  %v386_v1 = vsel %vm130_vm1, %v1033_v63, 0.0  ;;  %v757_v3 = vpop.eup %756 }
 0x29c   :  { %760 = vpow2.f32 %v368_v0  ;;  %387 = vadd.xlane.f32.xlu1 %v386_v1  ;;  %v380_v10 = vsel %vm130_vm1, %v757_v3, 0.0 }
 0x29e   :  { %v379_v2 = vpop.xlane.xlu0 %378 }
 0x29f   :  { %762 = vrcp.f32 %v379_v2  ;;  %v349_v4 = vpop.xlane.xlu2 %348 }
 0x2a0   :  { %v759_v5 = vpop.eup %758  ;;  %v357_v6 = vsub.f32 %v325_v39, %v349_v4 }
 0x2a1   :  { %v392_v7 = vsel %vm130_vm1, %v759_v5, 0.0 }
 0x2a2   :  { %v761_v8 = vpop.eup %760  ;;  %v372_v9 = vmul.f32 1.442695, %v357_v6  ;;  %393 = vadd.xlane.f32.xlu2 %v392_v7 }
 0x2a3   :  { %v389_v11 = vsel %vm130_vm1, %v761_v8, 0.0 }
 0x2a4   :  { %764 = vpow2.f32 %v372_v9  ;;  %381 = vadd.xlane.f32.xlu1 %v380_v10  ;;  %390 = vadd.xlane.f32.xlu0 %v389_v11 }
 0x2a5   :  { %v763_v12 = vpop.eup %762 }
 0x2a6   :  { %v407_v13 = vmul.f32 %v763_v12, %v749_v40 }
 0x2a7   :  { %v529_v14 = vpop.permute.xlu2 %528 }
 0x2a8   :  { %v415_v15 = vpack.c.bf16 %v407_v13, %v407_v13  ;;  %v534_v16 = vsel %vm427_vm3, %v529_v14, 0 }
 0x2a9   :  { %543 = vmatpush.bf16.msrb.mxu2 %v534_v16 }
 0x2aa   :  { %v765_v17 = vpop.eup %764  ;;  %710 = vmatmul.msk.bf16.vlgmr.msra.gmra.mxu2 %vm130_vm1, %v415_v15 }
 0x2ab   :  { %v395_v18 = vsel %vm130_vm1, %v765_v17, 0.0 }
 0x2ac   :  { %396 = vadd.xlane.f32.xlu0 %v395_v18 }
 0x2ba   :  { %570 = vrot.lane.b32.xlu2 %v964_v35, %s881_s26 }
 0x2bd   :  { %549 = vrot.lane.b32.xlu1 %v966_v36, %s881_s26 }
 0x2c0   :  { %507 = vrot.lane.b32.xlu0 %v968_v37, %s881_s26 }
 0x307   :  { %v385_v19 = vpop.xlane.xlu0 %384 }
 0x308   :  { %766 = vrcp.f32 %v385_v19 }
 0x30e   :  { %v767_v20 = vpop.eup %766 }
 0x30f   :  { %v409_v21 = vmul.f32 %v767_v20, %v751_v52  ;;  %v388_v22 = vpop.xlane.xlu1 %387 }
 0x311   :  { %v417_v23 = vpack.c.bf16 %v409_v21, %v409_v21  ;;  %v729_v21 = vld [vmem:[#allocation7 + $0x8] sm:$0xff] }
 0x313   :  { %712 = vmatmul.msk.bf16.vlgmr.msrb.gmra.mxu0 %vm130_vm1, %v417_v23 }
 0x315   :  { %v394_v24 = vpop.xlane.xlu2 %393 }
 0x317   :  { %v382_v25 = vpop.xlane.xlu1 %381  ;;  %v391_v26 = vpop.xlane.xlu0 %390 }
 0x318   :  { %768 = vrcp.f32 %v382_v25  ;;  %v440_v28 = vpop.f32.mrf.mxu1 }
 0x319   :  { %770 = vrcp.f32 %v391_v26  ;;  %v591_v43 = vpack.c.bf16 %v440_v28, %v440_v28 }
 0x31b   :  { %v601_v50 = vunpack.c.l.b16 %v591_v43 }
 0x31d   :  { %v571_v35 = vpop.permute.xlu2 %570 }
 0x31e   :  { %v769_v29 = vpop.eup %768  ;;  %v576_v36 = vsel %vm427_vm3, %v571_v35, 0 }
 0x31f   :  { %v771_v30 = vpop.eup %770  ;;  %v408_v37 = vmul.f32 %v769_v29, %v757_v3  ;;  %v397_v31 = vpop.xlane.xlu0 %396  ;;  %585 = vmatpush.bf16.msra.mxu0 %v576_v36  ;;  %v745_v29 = vld [vmem:[%s1078_s4] ss:$0 sm:$0xff] }
 0x320   :  { %v411_v32 = vmul.f32 %v771_v30, %v761_v8  ;;  %772 = vrcp.f32 %v397_v31  ;;  %v442_v33 = vpop.f32.mrf.mxu1 }
 0x321   :  { %v416_v34 = vpack.c.bf16 %v408_v37, %v408_v37  ;;  %774 = vrcp.f32 %v394_v24 }
 0x322   :  { %v419_v38 = vpack.c.bf16 %v411_v32, %v411_v32  ;;  %776 = vrcp.f32 %v388_v22  ;;  %v728_v22 = vld [vmem:[#allocation7] sm:$0xff] }
 0x323   :  { %711 = vmatmul.msk.bf16.vlgmr.msra.gmra.mxu3 %vm130_vm1, %v416_v34 }
 0x324   :  { %714 = vmatmul.msk.bf16.vlgmr.msrb.gmra.mxu2 %vm130_vm1, %v419_v38 }
 0x326   :  { %v773_v39 = vpop.eup %772 }
 0x327   :  { %v413_v40 = vmul.f32 %v773_v39, %v765_v17  ;;  %v775_v42 = vpop.eup %774 }
 0x328   :  { %v777_v46 = vpop.eup %776  ;;  %v412_v47 = vmul.f32 %v775_v42, %v759_v5 }
 0x329   :  { %v421_v41 = vpack.c.bf16 %v413_v40, %v413_v40  ;;  %v410_v52 = vmul.f32 %v777_v46, %v1033_v63 }
 0x32a   :  { %v420_v53 = vpack.c.bf16 %v412_v47, %v412_v47 }
 0x32b   :  { %716 = vmatmul.msk.bf16.vlgmr.msra.gmra.mxu0 %vm130_vm1, %v421_v41  ;;  %v418_v57 = vpack.c.bf16 %v410_v52, %v410_v52 }
 0x32d   :  { %v461_v44 = vpop.f32.mrf.mxu2 }
 0x32e   :  { %v592_v48 = vpack.c.bf16 %v461_v44, %v461_v44 }
 0x32f   :  { %v550_v49 = vpop.permute.xlu1 %549 }
 0x330   :  { %v602_v45 = vunpack.c.l.b16 %v592_v48  ;;  %v555_v51 = vsel %vm427_vm3, %v550_v49, 0 }
 0x331   :  { %564 = vmatpush.bf16.msrb.mxu3 %v555_v51 }
 0x332   :  { %v603_v54 = vpack.c.b16 %v602_v45, %v601_v50  ;;  %v508_v55 = vpop.permute.xlu0 %507 }
 0x333   :  { %v513_v56 = vsel %vm427_vm3, %v508_v55, 0 }
 0x334   :  { %522 = vmatpush.bf16.msrb.mxu1 %v513_v56  ;;  %715 = vmatmul.msk.bf16.vlgmr.msrb.gmra.mxu3 %vm130_vm1, %v420_v53 }
 0x335   :  { %v463_v27 = vpop.f32.mrf.mxu2 }
 0x337   :  { %713 = vmatmul.msk.bf16.vlgmr.msrb.gmra.mxu1 %vm130_vm1, %v418_v57 }
 0x338   :  { %662 = vmatpush.bf16.msra.mxu1 %v729_v21 }
 0x33c   :  { %663 = vmatpush.bf16.msra.mxu1 %v728_v22 }
 0x390   :  { %v503_v58 = vpop.f32.mrf.mxu0 }
 0x391   :  { %v594_v60 = vpack.c.bf16 %v503_v58, %v503_v58 }
 0x393   :  { %v607_v1 = vunpack.c.l.b16 %v594_v60 }
 0x398   :  { %v505_v59 = vpop.f32.mrf.mxu0 }
 0x3a6   :  { %v482_v61 = vpop.f32.mrf.mxu3 }
 0x3a7   :  { %v593_v62 = vpack.c.bf16 %v482_v61, %v482_v61  ;;  %v545_v0 = vpop.f32.mrf.mxu2 }
 0x3a8   :  { %v587_v63 = vpop.f32.mrf.mxu0  ;;  %v596_v7 = vpack.c.bf16 %v545_v0, %v545_v0 }
 0x3a9   :  { %v606_v2 = vunpack.c.l.b16 %v593_v62  ;;  %v598_v10 = vpack.c.bf16 %v587_v63, %v587_v63 }
 0x3aa   :  { %v614_v11 = vunpack.c.l.b16 %v596_v7 }
 0x3ab   :  { %v608_v3 = vpack.c.b16 %v607_v1, %v606_v2  ;;  %v621_v16 = vunpack.c.l.b16 %v598_v10 }
 0x3ad   :  { %609 = vrot.lane.b32.xlu0 %v608_v3, %s885_s1 }
 0x3ae   :  { %v484_v4 = vpop.f32.mrf.mxu3 }
 0x3af   :  { %v547_v5 = vpop.f32.mrf.mxu2 }
 0x3b0   :  { %v589_v6 = vpop.f32.mrf.mxu0 }
 0x3b4   :  { %v524_v8 = vpop.f32.mrf.mxu1 }
 0x3b5   :  { %v595_v9 = vpack.c.bf16 %v524_v8, %v524_v8 }
 0x3b7   :  { %v613_v12 = vunpack.c.l.b16 %v595_v9  ;;  %v566_v13 = vpop.f32.mrf.mxu3 }
 0x3b8   :  { %v597_v14 = vpack.c.bf16 %v566_v13, %v566_v13 }
 0x3b9   :  { %v615_v15 = vpack.c.b16 %v614_v11, %v613_v12 }
 0x3ba   :  { %v620_v17 = vunpack.c.l.b16 %v597_v14 }
 0x3bb   :  { %616 = vrot.lane.b32.xlu1 %v615_v15, %s891_s14 }
 0x3bc   :  { %v622_v18 = vpack.c.b16 %v621_v16, %v620_v17  ;;  %v526_v19 = vpop.f32.mrf.mxu1 }
 0x3be   :  { %623 = vrot.lane.b32.xlu2 %v622_v18, %s892_s15 }
 0x3bf   :  { %v568_v20 = vpop.f32.mrf.mxu3 }
 0x418   :  { %v624_v26 = vpop.permute.xlu2 %623 }
 0x41f   :  { %v610_v23 = vpop.permute.xlu0 %609 }
 0x420   :  { %v627_v24 = vsel %vm130_vm1, %v603_v54, %v610_v23 }
 0x42d   :  { %v617_v25 = vpop.permute.xlu1 %616 }
 0x42e   :  { %v630_v28 = vsel %vm628_vm4, %v627_v24, %v617_v25 }
 0x42f   :  { %v633_v35 = vsel %vm631_vm5, %v630_v28, %v624_v26 }
 0x430   :  { %725 = vmatmul.msk.bf16.vlgmr.msra.gmra.mxu1 %vm92_vm0, %v633_v35 }
 0x4ad   :  { %v665_v36 = vpop.f32.mrf.mxu1 }
 0x4ae   :  { %v666_v30 = vadd.f32 %v745_v29, %v665_v36 }
 0x4b0   :  { %670 = vst.msk [vmem:[#allocation8] sm:$0xff] %vm92_vm0, %v666_v30 }
 0x4b5   :  { %v667_v37 = vpop.f32.mrf.mxu1 }
 0x4b6   :  { %v668_v31 = vadd.f32 %v745_v29, %v667_v37 }
 0x4b8   :  { %671 = vst.msk [vmem:[#allocation8 + $0x8] sm:$0xff] %vm92_vm0, %v668_v31 }
 0x4b9   :  { %684 = dma.vmem_to_hbm [thread:$0]  %s677_s19, 256, %s679_s22, [#allocation4], %s884_s30, %s884_s30, %s885_s1  }
 0x4ba   :  { %878 = dma.done.wait [#allocation4], 256  }
 0x4bb   :  { %879 = vsyncadd [#allocation4], 4294967040 }
 0x4bc   :  { %689 = vsyncpa [#allocation3], 1 }
 0x4bd   :  { %690 = vsyncpa [#allocation6], 1 }
 0x4be   :  { %691 = vsyncpa [#allocation4], 1 }

</bundles_post_ra>
